<compile_context>
chip_gen: v6e
topology: v6e:2x2x1
jax: 0.10.0
libtpu: 0.0.40
codegen_flags: <defaults>
</compile_context>

<pallas_src>
import functools

import jax
import jax.numpy as jnp
from jax.experimental import pallas as pl
from jax.experimental.pallas import tpu as pltpu

LN_EPS = 1e-5  # torch.nn.LayerNorm default


def _round_up(x, m):
    return ((x + m - 1) // m) * m


# ----------------------------- kernel -----------------------------
def value_mlp_kernel(dims, offs, cdt, s_ref, p_ref, o_ref):
    """Feature-major ValueMLP forward for one batch tile.

    dims = (R, F, H) static; offs = static row offsets into the packed slab;
    cdt  = dtype used for MXU operands (bf16 or f32).

    s_ref: (TB, R)   batch tile of inputs (dtype cdt)
    p_ref: (P, C)    packed parameter slab (f32, VMEM-resident)
    o_ref: (1, TB)   lane-dense value row for this batch tile (f32)
    """
    R, F, H = dims
    (o_wtr, o_btr, o_g, o_beta, o_w1, o_b1, o_w2, o_b2, o_w3, o_b3) = offs

    # Static, sublane-aligned views into the resident slab.  Weights are kept
    # in nn.Linear (out_features, in_features) layout; biases / LN params are
    # stored as columns so they broadcast over the lane (batch) axis.
    w_tr = p_ref[o_wtr:o_wtr + F, :R].astype(cdt)   # (F, R)
    b_tr = p_ref[o_btr:o_btr + F, :1]               # (F, 1)
    g    = p_ref[o_g:o_g + F, :1]                   # (F, 1)
    beta = p_ref[o_beta:o_beta + F, :1]             # (F, 1)
    w1   = p_ref[o_w1:o_w1 + H, :F].astype(cdt)     # (H, F)
    b1   = p_ref[o_b1:o_b1 + H, :1]                 # (H, 1)
    w2   = p_ref[o_w2:o_w2 + H, :H].astype(cdt)     # (H, H)
    b2   = p_ref[o_b2:o_b2 + H, :1]                 # (H, 1)
    w3   = p_ref[o_w3:o_w3 + 1, :H].astype(cdt)     # (1, H)
    b3   = p_ref[o_b3:o_b3 + 1, :1]                 # (1, 1)

    x = s_ref[...]                                  # (TB, R), dtype cdt

    # ---- trunk Linear, feature-major: h = W_tr @ x^T -> (F, TB) ----
    # Contract the repr dim of both operands ("q @ k.T" pattern) so the batch
    # lands on the lane axis without transposing x.
    h = jax.lax.dot_general(w_tr, x, (((1,), (1,)), ((), ())),
                            preferred_element_type=jnp.float32)  # (F, TB) f32
    h = h + b_tr

    # ---- LayerNorm over the feature (sublane) axis, single-pass stats ----
    inv_f = 1.0 / F
    s1 = jnp.sum(h, axis=0, keepdims=True)          # (1, TB)
    s2 = jnp.sum(h * h, axis=0, keepdims=True)      # (1, TB)
    mu = s1 * inv_f
    var = s2 * inv_f - mu * mu
    h = (h - mu) * jax.lax.rsqrt(var + LN_EPS) * g + beta
    h = jnp.maximum(h, 0.0)                         # trunk ReLU

    # ---- MLP (depth=2) + scalar head, all feature-major ----
    h = jnp.maximum(
        jnp.dot(w1, h.astype(cdt), preferred_element_type=jnp.float32) + b1, 0.0)
    h = jnp.maximum(
        jnp.dot(w2, h.astype(cdt), preferred_element_type=jnp.float32) + b2, 0.0)
    v = jnp.dot(w3, h.astype(cdt), preferred_element_type=jnp.float32) + b3
    o_ref[...] = v.astype(o_ref.dtype)              # (1, TB) lane-dense store


# ----------------------------- packing -----------------------------
def pack_params(params):
    """Pack all parameters into one (P, C) f32 slab (single DMA, resident).

    `params` are in torch layout: weights (out_features, in_features),
    biases / LN params 1-D.  Each segment's rows are padded to a multiple of 8
    so all in-kernel views are sublane-aligned static slices."""
    w_tr, b_tr, g, beta, w1, b1, w2, b2, w3, b3 = params
    F, R = w_tr.shape
    H = w1.shape[0]
    C = max(R, F, H, 1)

    segs = [
        w_tr,                   # (F, R)
        b_tr.reshape(-1, 1),    # (F, 1)
        g.reshape(-1, 1),       # (F, 1)
        beta.reshape(-1, 1),    # (F, 1)
        w1,                     # (H, F)
        b1.reshape(-1, 1),      # (H, 1)
        w2,                     # (H, H)
        b2.reshape(-1, 1),      # (H, 1)
        w3.reshape(1, -1),      # (1, H)
        b3.reshape(1, 1),       # (1, 1)
    ]

    offs, padded, rows = [], [], 0
    for a in segs:
        offs.append(rows)
        r, c = a.shape
        rp = _round_up(r, 8)
        buf = jnp.zeros((rp, C), jnp.float32).at[:r, :c].set(a.astype(jnp.float32))
        padded.append(buf)
        rows += rp
    return jnp.concatenate(padded, axis=0), tuple(offs)


# ----------------------------- wrapper -----------------------------
def _choose_tile(B, block_batch):
    # Desired tile: multiple of 128 in [128, 4096] (amortizes the ~0.35 us
    # per-grid-step overhead), capped so there are >=2 grid steps whenever
    # B > 128 (pipelining + both v7x TensorCores via the "parallel" axis).
    desired = min(max(_round_up(block_batch, 128), 128), 4096)
    cap = _round_up(pl.cdiv(B, 2), 128)
    return max(128, min(desired, cap))


def value_mlp(s, params, *, block_batch=2048, matmul_dtype=jnp.bfloat16):
    """s: (B, repr_dim).  params: 10-tuple in torch layout (see make_params).

    Matmul operands use `matmul_dtype` (bf16 by default: halves the input DMA
    bytes and vreg traffic); LayerNorm / elementwise math and all matmul
    accumulation are f32."""
    B, R = s.shape
    F = params[0].shape[0]
    H = params[4].shape[0]
    slab, offs = pack_params(params)

    tb = _choose_tile(B, block_batch)
    steps = pl.cdiv(B, tb)     # partial last block handled by Pallas masking

    kernel = functools.partial(value_mlp_kernel, (R, F, H), offs, matmul_dtype)

    out = pl.pallas_call(
        kernel,
        out_shape=jax.ShapeDtypeStruct((1, B), jnp.float32),
        grid=(steps,),
        in_specs=[
            # batch tile of inputs, pipelined over the grid
            pl.BlockSpec((tb, R), lambda i: (i, 0)),
            # packed parameter slab: constant block index -> fetched once,
            # VMEM-resident across all grid steps
            pl.BlockSpec(slab.shape, lambda i: (0, 0)),
        ],
        # lane-dense output: batch on the 128-lane axis
        out_specs=pl.BlockSpec((1, tb), lambda i: (0, i)),
        compiler_params=pltpu.CompilerParams(
            dimension_semantics=("parallel",)),
    )(s.astype(matmul_dtype), slab)

    return out.reshape(B, 1)


# ------------------ deterministic parameter construction ------------------
def _orthogonal(key, n_out, n_in, gain=1.0):
    """Emulates nn.init.orthogonal_ on an (n_out, n_in) weight (torch layout)."""
    a = jax.random.normal(key, (max(n_in, n_out), min(n_in, n_out)), jnp.float32)
    q, r = jnp.linalg.qr(a)
    q = q * jnp.sign(jnp.diagonal(r))
    if n_out < n_in:
        q = q.T
    return (gain * q[:n_out, :n_in]).astype(jnp.float32)


def make_params(key, repr_dim, feature_dim, hidden_dim):
    k_tr, k1, k2, k3 = jax.random.split(key, 4)
    w_tr = _orthogonal(k_tr, feature_dim, repr_dim)        # (F, R)
    b_tr = jnp.zeros((feature_dim,), jnp.float32)
    gamma = jnp.ones((feature_dim,), jnp.float32)
    beta = jnp.zeros((feature_dim,), jnp.float32)
    w1 = _orthogonal(k1, hidden_dim, feature_dim)          # (H, F)
    b1 = jnp.zeros((hidden_dim,), jnp.float32)
    w2 = _orthogonal(k2, hidden_dim, hidden_dim)           # (H, H)
    b2 = jnp.zeros((hidden_dim,), jnp.float32)
    w3 = _orthogonal(k3, 1, hidden_dim)                    # (1, H)
    b3 = jnp.zeros((1,), jnp.float32)
    return (w_tr, b_tr, gamma, beta, w1, b1, w2, b2, w3, b3)


# ----------------------------- references -----------------------------
def value_mlp_ref(s, params):
    """Pure-JAX f32 reference matching the PyTorch module."""
    w_tr, b_tr, g, beta, w1, b1, w2, b2, w3, b3 = params
    h = s @ w_tr.T + b_tr
    mu = h.mean(-1, keepdims=True)
    var = ((h - mu) ** 2).mean(-1, keepdims=True)
    h = (h - mu) / jnp.sqrt(var + LN_EPS) * g + beta
    h = jax.nn.relu(h)
    h = jax.nn.relu(h @ w1.T + b1)
    h = jax.nn.relu(h @ w2.T + b2)
    return h @ w3.T + b3


def value_mlp_ref_mixed(s, params, cdt):
    """Reference using the same mixed precision as the kernel (cdt matmul
    operands, f32 accumulation and LayerNorm)."""
    w_tr, b_tr, g, beta, w1, b1, w2, b2, w3, b3 = params

    def mm(a, w):
        return jnp.dot(a.astype(cdt), w.T.astype(cdt),
                       preferred_element_type=jnp.float32)

    h = mm(s, w_tr) + b_tr
    mu = h.mean(-1, keepdims=True)
    var = ((h - mu) ** 2).mean(-1, keepdims=True)
    h = (h - mu) * jax.lax.rsqrt(var + LN_EPS) * g + beta
    h = jax.nn.relu(h)
    h = jax.nn.relu(mm(h, w1) + b1)
    h = jax.nn.relu(mm(h, w2) + b2)
    return mm(h, w3) + b3


if __name__ == "__main__":
    B, REPR_DIM, FEATURE_DIM, HIDDEN_DIM = 512, 16, 32, 32

    key = jax.random.PRNGKey(0)
    k_s, k_p = jax.random.split(key)
    s = jax.random.normal(k_s, (B, REPR_DIM), jnp.float32)
    params = make_params(k_p, REPR_DIM, FEATURE_DIM, HIDDEN_DIM)

    ref = value_mlp_ref(s, params)

    # 1) f32 matmul operands: must match the f32 reference tightly.
    out_f32 = jax.block_until_ready(
        value_mlp(s, params, block_batch=256, matmul_dtype=jnp.float32))
    assert out_f32.shape == (B, 1)
    assert jnp.allclose(out_f32, ref, atol=2e-3, rtol=2e-3)

    # 2) default bf16 matmul operands (f32 LN/accum): match a mixed-precision
    #    reference tightly and the f32 reference loosely.
    out_bf16 = jax.block_until_ready(value_mlp(s, params))
    ref_mixed = value_mlp_ref_mixed(s, params, jnp.bfloat16)
    assert jnp.allclose(out_bf16, ref_mixed, atol=2e-3, rtol=2e-3)
    assert jnp.allclose(out_bf16, ref, atol=1e-1, rtol=1e-1)

    # 3) batch not a multiple of the tile: partial last block, no jnp.pad copy.
    Bt = 200
    out_tail = jax.block_until_ready(
        value_mlp(s[:Bt], params, matmul_dtype=jnp.float32))
    assert out_tail.shape == (Bt, 1)
    assert jnp.allclose(out_tail, ref[:Bt], atol=2e-3, rtol=2e-3)

    print("KERNEL_OK")
</pallas_src>

<mosaic_0001>
module attributes {stable_mosaic.version = 11 : i64} {
  func.func @value_mlp_kernel(%arg0: i32, %arg1: memref<256x16xf32, #tpu.memory_space<vmem>>, %arg2: memref<272x32xf32, #tpu.memory_space<vmem>>, %arg3: memref<1x256xf32, #tpu.memory_space<vmem>>) attributes {dimension_semantics = [#tpu.dimension_semantics<parallel>], iteration_bounds = array<i64: 2>, scalar_prefetch = 0 : i64, scratch_operands = 0 : i64, tpu.core_type = #tpu.core_type<tc>, window_params = [{transform_indices = @transform_0, window_bounds = array<i64: 256, 16>}, {pipeline_mode = #tpu.pipeline_mode<synchronous>, transform_indices = @transform_1, window_bounds = array<i64: 272, 32>}, {transform_indices = @transform_2, window_bounds = array<i64: 1, 256>}]} {
    %c0 = arith.constant 0 : index
    %c0_0 = arith.constant 0 : index
    %0 = vector.load %arg2[%c0, %c0_0] : memref<272x32xf32, #tpu.memory_space<vmem>>, vector<32x16xf32>
    %c32 = arith.constant 32 : index
    %c0_1 = arith.constant 0 : index
    %1 = vector.load %arg2[%c32, %c0_1] : memref<272x32xf32, #tpu.memory_space<vmem>>, vector<32x1xf32>
    %c64 = arith.constant 64 : index
    %c0_2 = arith.constant 0 : index
    %2 = vector.load %arg2[%c64, %c0_2] : memref<272x32xf32, #tpu.memory_space<vmem>>, vector<32x1xf32>
    %c96 = arith.constant 96 : index
    %c0_3 = arith.constant 0 : index
    %3 = vector.load %arg2[%c96, %c0_3] : memref<272x32xf32, #tpu.memory_space<vmem>>, vector<32x1xf32>
    %c128 = arith.constant 128 : index
    %c0_4 = arith.constant 0 : index
    %4 = vector.load %arg2[%c128, %c0_4] : memref<272x32xf32, #tpu.memory_space<vmem>>, vector<32x32xf32>
    %c160 = arith.constant 160 : index
    %c0_5 = arith.constant 0 : index
    %5 = vector.load %arg2[%c160, %c0_5] : memref<272x32xf32, #tpu.memory_space<vmem>>, vector<32x1xf32>
    %c192 = arith.constant 192 : index
    %c0_6 = arith.constant 0 : index
    %6 = vector.load %arg2[%c192, %c0_6] : memref<272x32xf32, #tpu.memory_space<vmem>>, vector<32x32xf32>
    %c224 = arith.constant 224 : index
    %c0_7 = arith.constant 0 : index
    %7 = vector.load %arg2[%c224, %c0_7] : memref<272x32xf32, #tpu.memory_space<vmem>>, vector<32x1xf32>
    %c256 = arith.constant 256 : index
    %c0_8 = arith.constant 0 : index
    %8 = vector.load %arg2[%c256, %c0_8] : memref<272x32xf32, #tpu.memory_space<vmem>>, vector<1x32xf32>
    %c264 = arith.constant 264 : index
    %c0_9 = arith.constant 0 : index
    %9 = vector.load %arg2[%c264, %c0_9] : memref<272x32xf32, #tpu.memory_space<vmem>>, vector<1x1xf32>
    %c0_10 = arith.constant 0 : index
    %c0_11 = arith.constant 0 : index
    %10 = vector.load %arg1[%c0_10, %c0_11] : memref<256x16xf32, #tpu.memory_space<vmem>>, vector<256x16xf32>
    %cst = arith.constant dense<0.000000e+00> : vector<32x256xf32>
    %11 = tpu.matmul %0, %10, %cst {dimension_numbers = #tpu.dot_dimension_numbers<[1], [1], [0], [0], [0, 0, 1, 0], [], []>} : vector<32x16xf32>, vector<256x16xf32>, vector<32x256xf32> -> vector<32x256xf32>
    %12 = vector.broadcast %1 : vector<32x1xf32> to vector<32x256xf32>
    %13 = arith.addf %11, %12 : vector<32x256xf32>
    %cst_12 = arith.constant dense<0.000000e+00> : vector<256xf32>
    %14 = vector.multi_reduction <add>, %13, %cst_12 [0] : vector<32x256xf32> to vector<256xf32>
    %15 = vector.shape_cast %14 : vector<256xf32> to vector<1x256xf32>
    %16 = arith.mulf %13, %13 : vector<32x256xf32>
    %cst_13 = arith.constant dense<0.000000e+00> : vector<256xf32>
    %17 = vector.multi_reduction <add>, %16, %cst_13 [0] : vector<32x256xf32> to vector<256xf32>
    %18 = vector.shape_cast %17 : vector<256xf32> to vector<1x256xf32>
    %cst_14 = arith.constant 3.125000e-02 : f32
    %19 = vector.broadcast %cst_14 : f32 to vector<1x256xf32>
    %20 = arith.mulf %15, %19 : vector<1x256xf32>
    %cst_15 = arith.constant 3.125000e-02 : f32
    %21 = vector.broadcast %cst_15 : f32 to vector<1x256xf32>
    %22 = arith.mulf %18, %21 : vector<1x256xf32>
    %23 = arith.mulf %20, %20 : vector<1x256xf32>
    %24 = arith.subf %22, %23 : vector<1x256xf32>
    %25 = vector.broadcast %20 : vector<1x256xf32> to vector<32x256xf32>
    %26 = arith.subf %13, %25 : vector<32x256xf32>
    %cst_16 = arith.constant 9.99999974E-6 : f32
    %27 = vector.broadcast %cst_16 : f32 to vector<1x256xf32>
    %28 = arith.addf %24, %27 : vector<1x256xf32>
    %29 = math.rsqrt %28 : vector<1x256xf32>
    %30 = vector.broadcast %29 : vector<1x256xf32> to vector<32x256xf32>
    %31 = arith.mulf %26, %30 : vector<32x256xf32>
    %32 = vector.broadcast %2 : vector<32x1xf32> to vector<32x256xf32>
    %33 = arith.mulf %31, %32 : vector<32x256xf32>
    %34 = vector.broadcast %3 : vector<32x1xf32> to vector<32x256xf32>
    %35 = arith.addf %33, %34 : vector<32x256xf32>
    %cst_17 = arith.constant 0.000000e+00 : f32
    %36 = vector.broadcast %cst_17 : f32 to vector<32x256xf32>
    %37 = arith.maximumf %35, %36 : vector<32x256xf32>
    %cst_18 = arith.constant dense<0.000000e+00> : vector<32x256xf32>
    %38 = tpu.matmul %4, %37, %cst_18 {dimension_numbers = #tpu.dot_dimension_numbers<[1], [0], [0], [1], [0, 0, 1, 1], [], []>} : vector<32x32xf32>, vector<32x256xf32>, vector<32x256xf32> -> vector<32x256xf32>
    %39 = vector.broadcast %5 : vector<32x1xf32> to vector<32x256xf32>
    %40 = arith.addf %38, %39 : vector<32x256xf32>
    %cst_19 = arith.constant 0.000000e+00 : f32
    %41 = vector.broadcast %cst_19 : f32 to vector<32x256xf32>
    %42 = arith.maximumf %40, %41 : vector<32x256xf32>
    %cst_20 = arith.constant dense<0.000000e+00> : vector<32x256xf32>
    %43 = tpu.matmul %6, %42, %cst_20 {dimension_numbers = #tpu.dot_dimension_numbers<[1], [0], [0], [1], [0, 0, 1, 1], [], []>} : vector<32x32xf32>, vector<32x256xf32>, vector<32x256xf32> -> vector<32x256xf32>
    %44 = vector.broadcast %7 : vector<32x1xf32> to vector<32x256xf32>
    %45 = arith.addf %43, %44 : vector<32x256xf32>
    %cst_21 = arith.constant 0.000000e+00 : f32
    %46 = vector.broadcast %cst_21 : f32 to vector<32x256xf32>
    %47 = arith.maximumf %45, %46 : vector<32x256xf32>
    %cst_22 = arith.constant dense<0.000000e+00> : vector<1x256xf32>
    %48 = tpu.matmul %8, %47, %cst_22 {dimension_numbers = #tpu.dot_dimension_numbers<[1], [0], [0], [1], [0, 0, 1, 1], [], []>} : vector<1x32xf32>, vector<32x256xf32>, vector<1x256xf32> -> vector<1x256xf32>
    %49 = vector.broadcast %9 : vector<1x1xf32> to vector<1x256xf32>
    %50 = arith.addf %48, %49 : vector<1x256xf32>
    %c0_23 = arith.constant 0 : index
    %c0_24 = arith.constant 0 : index
    %51 = vector.load %arg3[%c0_23, %c0_24] : memref<1x256xf32, #tpu.memory_space<vmem>>, vector<1x256xf32>
    tpu.vector_store %arg3[%c0_23, %c0_24], %50 {strides = array<i32>} : memref<1x256xf32, #tpu.memory_space<vmem>>, vector<1x256xf32>,
    return
  }
  func.func @transform_0(%arg0: i32) -> (i32, i32) {
    %c0_i32 = arith.constant 0 : i32
    %c0_i32_0 = arith.constant 0 : i32
    return %arg0, %c0_i32 : i32, i32
  }
  func.func @transform_1(%arg0: i32) -> (i32, i32) {
    %c0_i32 = arith.constant 0 : i32
    %c0_i32_0 = arith.constant 0 : i32
    %c0_i32_1 = arith.constant 0 : i32
    return %c0_i32, %c0_i32_0 : i32, i32
  }
  func.func @transform_2(%arg0: i32) -> (i32, i32) {
    %c0_i32 = arith.constant 0 : i32
    %c0_i32_0 = arith.constant 0 : i32
    return %c0_i32, %arg0 : i32, i32
  }
}

</mosaic_0001>

<bundles_post_ra>
// kernel: tpu_custom_call.1
= control target key start
LH: loop header
LB: loop body
LE: loop exit
PB: predicated region body
PF: predicated region fallthrough
CT: control target
= control target key end

     0   :  { %7 = vsyncpa [#allocation3], 0  ;;  %s1547_s0 = inlined_call_operand.vmem [shape: f32[512,16], index: 0, kind: input, shape index: {}]   ;;  %s1548_s1 = inlined_call_operand.vmem [shape: f32[272,32], index: 1, kind: input, shape index: {}]   ;;  %s1549_s2 = inlined_call_operand.hbm [shape: f32[1,512], index: 2, kind: output, shape index: {}]  }
   0x1   :  { %9 = vsyncpa [#allocation3 + $0x1], 0  ;;  %s1227_s9 = smov 0   ;;  %s1229_s10 = smov 0  }
   0x2   :  { %s1231_s11 = smov 0   ;;  %s1233_s12 = smov 0  }
   0x3 LB: > { %s999_s13 = sadd.s32 4294967295, %s1206_s12   ;;  %s1000_s14 = sadd.s32 4294967294, %s1206_s12   ;;  %s1206_s12 = sphi %s1233_s12, %s1555_s12   ;;  %s1202_s11 = sphi %s1231_s11, %s1554_s11   ;;  %s1198_s10 = sphi %s1229_s10, %s1553_s10   ;;  %s1194_s9 = sphi %s1227_s9, %s1552_s9  }
   0x4   : > { %s1250_s15 = sadd.s32 1, %s1206_s12   ;;  %s69_s16 = sadd.s32 1, %s1202_s11 }
   0x5   : > { %s66_s17 = ssub.s32 %s1206_s12, %s1250_s15  ;;  %p79_p0 = scmp.ne.s32.totalorder %s1202_s11, %s1198_s10 }
   0x6   : > { %p67_p1 = scmp.eq.s32.totalorder %s66_s17, 0  ;;  %p80_p2 = scmp.eq.s32.totalorder %s999_s13, 1 }
   0x7   : > { %p85_p3 = scmp.ne.s32.totalorder %s1198_s10, %s1194_s9  ;;  %p86_p4 = scmp.eq.s32.totalorder %s1000_s14, 1 }
   0x8   : > { %s1260_s18 = scalar_select %p67_p1, %s1202_s11, %s69_s16  }
   0x9   : > { %p1262_p5 = por %p80_p2, %p79_p0  ;;  %p1266_p6 = por %p86_p4, %p85_p3 }
   0xa   : > { %p1003_p7 = scmp.ge.s32.totalorder %s1206_s12, 1  ;;  %p116_p8 = scmp.lt.s32.totalorder %s1206_s12, 3 }
   0xc   : > { %p117_p9 = pnand %p1003_p7, %p116_p8 }
   0xd   : > { %s1272_s21 = sshll.u32 (!%p117_p9), %s999_s13, 5  ;;  %s135_s16 = sand.u32 (!%p117_p9), 1, %s1198_s10  }
   0xe   : > { %120 = sbr.rel (%p117_p9) target bundleno = 1003 (0x3eb), region = 28  ;;  %p139_p10 = scmp.lt.s32.totalorder (!%p117_p9), %s1272_s21, 63 }
   0xf   : > { %s1004_s17 = sshll.u32 (!%p117_p9), %s135_s16, 1  ;;  %s939_s26 = scalar_lea.hbm (!%p117_p9), %s1549_s2, %s1272_s21 }
  0x10   : > { %s137_s22 = scalar_lea.vmem (!%p117_p9), [#allocation2], %s1004_s17  ;;  %s927_s27 = scalar_lea.sflag (!%p117_p9), [#allocation3], %s135_s16 }
  0x11   : > { %s941_s23 = sshll.u32 (!%p117_p9), %s137_s22, 4  ;;  %s1211_s29 = smov (!%p117_p9), [#allocation2]   ;;  %s942_s23 = int_to_ptr.vmem [resolvable:$true] %s941_s23 }
  0x12   : > { %s1150_s30 = sshll.u32 (!%p117_p9), %s1211_s29, 4  ;;  %s1151_s30 = int_to_ptr.vmem [resolvable:$false] %s1150_s30 }
  0x13   : > { %vm231_vm0 = vcmask 130048   ;;  %v1277_v0 = vld [vmem:[%s1548_s1] sm:$0xff]  ;;  %v1208_v1 = vmov 0   ;;  %v151_v3 = vld [vmem:[%s1548_s1 + $0x30] sm:$0xff]  ;;  %s140_s28 = scalar_select %p139_p10, %s1272_s21, 63  ;;  %v150_v4 = vld [vmem:[%s1548_s1 + $0x28] sm:$0xff] }
  0x14   : > { %1090 = vmatprep.mubr.msk.f32.mxu0 %vm231_vm0, %v1277_v0  ;;  %1140 = vset.pattern.permute.xlu0 %v1208_v1  ;;  %v149_v2 = vld [vmem:[%s1548_s1 + $0x20] sm:$0xff]  ;;  %v152_v5 = vld [vmem:[%s1548_s1 + $0x38] sm:$0xff]  ;;  %v155_v10 = vld [vmem:[%s1548_s1 + $0x50] sm:$0xff]  ;;  %v1209_v58 = vmov 0.0   ;;  %vm585_vm1 = vcmask 261120   ;;  %s1152_s3 = scalar_lea.vmem %s1151_s30, 64  ;;  %p1153_p0 = scmp.lt.s32.totalorder %s942_s23, %s1151_s30 }
  0x15   : > { %213 = vperm.xlu0 %1140, %v149_v2   ;;  %1141 = vset.pattern.permute.xlu1 %v1208_v1  ;;  %s1006_s5 = sshll.u32 %s140_s28, 3  ;;  %v156_v6 = vld [vmem:[%s1548_s1 + $0x58] sm:$0xff]  ;;  %v154_v14 = vld [vmem:[%s1548_s1 + $0x48] sm:$0xff]  ;;  %v159_v17 = vld [vmem:[%s1548_s1 + $0x70] sm:$0xff]  ;;  %s1146_s28 = scalar_lea.vmem %s942_s23, 32 }
  0x16   : > { %223 = vperm.xlu1 %1141, %v151_v3   ;;  %s1298_s8 = scalar_lea.vmem %s1547_s0, %s1006_s5  ;;  %v160_v13 = vld [vmem:[%s1548_s1 + $0x78] sm:$0xff]  ;;  %v153_v18 = vld [vmem:[%s1548_s1 + $0x40] sm:$0xff]  ;;  %v158_v21 = vld [vmem:[%s1548_s1 + $0x68] sm:$0xff]  ;;  %662 = vmatprep.mubr.f32.mxu1 %v1209_v58  ;;  %p1147_p11 = scmp.ne.s32.totalorder %s942_s23, %s1146_s28 }
  0x17   : > { %v210_v7 = vld [vmem:[%s1298_s8 + $0xf8] sm:$0xff]  ;;  %v209_v9 = vld [vmem:[%s1298_s8 + $0xf0] sm:$0xff]  ;;  %v208_v12 = vld [vmem:[%s1298_s8 + $0xe8] sm:$0xff]  ;;  %p1154_p1 = scmp.lt.s32.totalorder %s1152_s3, %s1146_s28 }
  0x18   : > { %v194_v8 = vld [vmem:[%s1298_s8 + $0x78] sm:$0xff]  ;;  %1058 = vmatprep.subr.msk.mxu0 %vm231_vm0, %v210_v7  ;;  %v193_v11 = vld [vmem:[%s1298_s8 + $0x70] sm:$0xff]  ;;  %v192_v15 = vld [vmem:[%s1298_s8 + $0x68] sm:$0xff]  ;;  %p1148_p12 = pnand %p1147_p11, %p1262_p5 }
  0x19   : > { %218 = vperm.xlu0 %1140, %v150_v4   ;;  %1059 = vmatpush3.xpose.msk.msra.mxu0 %vm231_vm0, %v194_v8  ;;  %v207_v16 = vld [vmem:[%s1298_s8 + $0xe0] sm:$0xff]  ;;  %v206_v20 = vld [vmem:[%s1298_s8 + $0xd8] sm:$0xff]  ;;  %v205_v24 = vld [vmem:[%s1298_s8 + $0xd0] sm:$0xff]  ;;  %p1155_p2 = por %p1154_p1, %p1153_p0 }
  0x1a   : > { %228 = vperm.xlu1 %1141, %v152_v5   ;;  %1060 = vmatprep.subr.msk.mxu0 %vm231_vm0, %v209_v9  ;;  %v191_v19 = vld [vmem:[%s1298_s8 + $0x60] sm:$0xff]  ;;  %v190_v23 = vld [vmem:[%s1298_s8 + $0x58] sm:$0xff]  ;;  %v167_v26 = vld [vmem:[%s1548_s1 + $0xb0] sm:$0xff]  ;;  %p1149_p13 = pneg %p1148_p12 }
  0x1b   : > { %v157_v22 = vld [vmem:[%s1548_s1 + $0x60] sm:$0xff]  ;;  %v168_v25 = vld [vmem:[%s1548_s1 + $0xb8] sm:$0xff]  ;;  %v189_v27 = vld [vmem:[%s1298_s8 + $0x50] sm:$0xff] }
  0x1c   : > { %v204_v28 = vld [vmem:[%s1298_s8 + $0xc8] sm:$0xff]  ;;  %v165_v30 = vld [vmem:[%s1548_s1 + $0xa0] sm:$0xff]  ;;  %v176_v33 = vld [vmem:[%s1548_s1 + $0xf8] sm:$0xff]  ;;  %p1156_p3 = pnand %p1155_p2, %p1149_p13 }
  0x1d   : > { %518 = vperm.xlu0 %1140, %v156_v6   ;;  %1061 = vmatpush3.xpose.msk.msra.mxu0 %vm231_vm0, %v193_v11  ;;  %v166_v29 = vld [vmem:[%s1548_s1 + $0xa8] sm:$0xff]  ;;  %v203_v32 = vld [vmem:[%s1298_s8 + $0xc0] sm:$0xff]  ;;  %v175_v34 = vld [vmem:[%s1548_s1 + $0xf0] sm:$0xff] }
  0x1e   : > { %513 = vperm.xlu1 %1141, %v155_v10   ;;  %1062 = vmatprep.subr.msk.mxu0 %vm231_vm0, %v208_v12  ;;  %v188_v31 = vld [vmem:[%s1298_s8 + $0x48] sm:$0xff]  ;;  %v187_v35 = vld [vmem:[%s1298_s8 + $0x40] sm:$0xff]  ;;  %v202_v36 = vld [vmem:[%s1298_s8 + $0xb8] sm:$0xff] }
  0x1f   : > { %v174_v37 = vld [vmem:[%s1548_s1 + $0xe8] sm:$0xff]  ;;  %v173_v38 = vld [vmem:[%s1548_s1 + $0xe0] sm:$0xff]  ;;  %v186_v39 = vld [vmem:[%s1298_s8 + $0x38] sm:$0xff] }
  0x20   : > { %v201_v40 = vld [vmem:[%s1298_s8 + $0xb0] sm:$0xff]  ;;  %v178_v41 = vld [vmem:[%s1548_s1 + $0x108] sm:$0x1]  ;;  %v199_v45 = vld [vmem:[%s1298_s8 + $0xa0] sm:$0xff] }
  0x21   : > { %546 = vperm.xlu0 %1140, %v160_v13   ;;  %1063 = vmatpush3.xpose.msk.msra.mxu0 %vm231_vm0, %v192_v15  ;;  %v185_v42 = vld [vmem:[%s1298_s8 + $0x30] sm:$0xff]  ;;  %v200_v43 = vld [vmem:[%s1298_s8 + $0xa8] sm:$0xff]  ;;  %v183_v46 = vld [vmem:[%s1298_s8 + $0x20] sm:$0xff] }
  0x22   : > { %508 = vperm.xlu1 %1141, %v154_v14   ;;  %1064 = vmatprep.subr.msk.mxu0 %vm231_vm0, %v207_v16  ;;  %v184_v44 = vld [vmem:[%s1298_s8 + $0x28] sm:$0xff]  ;;  %v198_v47 = vld [vmem:[%s1298_s8 + $0x98] sm:$0xff]  ;;  %v197_v49 = vld [vmem:[%s1298_s8 + $0x90] sm:$0xff] }
  0x23   : > { %v182_v48 = vld [vmem:[%s1298_s8 + $0x18] sm:$0xff]  ;;  %v181_v50 = vld [vmem:[%s1298_s8 + $0x10] sm:$0xff]  ;;  %v196_v51 = vld [vmem:[%s1298_s8 + $0x88] sm:$0xff] }
  0x24   : > { %v180_v52 = vld [vmem:[%s1298_s8 + $0x8] sm:$0xff]  ;;  %v195_v53 = vld [vmem:[%s1298_s8 + $0x80] sm:$0xff]  ;;  %v147_v56 = vld [vmem:[%s1548_s1 + $0x10] sm:$0xff] }
  0x25   : > { %541 = vperm.xlu0 %1140, %v159_v17   ;;  %1065 = vmatpush3.xpose.msk.msra.mxu0 %vm231_vm0, %v191_v19  ;;  %v179_v54 = vld [vmem:[%s1298_s8] sm:$0xff]  ;;  %v146_v55 = vld [vmem:[%s1548_s1 + $0x8] sm:$0xff]  ;;  %v148_v57 = vld [vmem:[%s1548_s1 + $0x18] sm:$0xff] }
  0x26   : > { %503 = vperm.xlu1 %1141, %v153_v18   ;;  %1066 = vmatprep.subr.msk.mxu0 %vm231_vm0, %v206_v20 }
  0x29   : > { %536 = vperm.xlu0 %1140, %v158_v21   ;;  %1067 = vmatpush3.xpose.msk.msra.mxu0 %vm231_vm0, %v190_v23 }
  0x2a   : > { %531 = vperm.xlu1 %1141, %v157_v22   ;;  %1068 = vmatprep.subr.msk.mxu0 %vm231_vm0, %v205_v24 }
  0x2d   : > { %582 = vperm.xlu0 %1140, %v168_v25   ;;  %1069 = vmatpush3.xpose.msk.msra.mxu0 %vm231_vm0, %v189_v27 }
  0x2e   : > { %577 = vperm.xlu1 %1141, %v167_v26   ;;  %1070 = vmatprep.subr.msk.mxu0 %vm231_vm0, %v204_v28 }
  0x31   : > { %572 = vperm.xlu0 %1140, %v166_v29   ;;  %1071 = vmatpush3.xpose.msk.msra.mxu0 %vm231_vm0, %v188_v31 }
  0x32   : > { %567 = vperm.xlu1 %1141, %v165_v30   ;;  %1072 = vmatprep.subr.msk.mxu0 %vm231_vm0, %v203_v32 }
  0x35   : > { %712 = vperm.xlu0 %1140, %v176_v33   ;;  %1073 = vmatpush3.xpose.msk.msra.mxu0 %vm231_vm0, %v187_v35 }
  0x36   : > { %707 = vperm.xlu1 %1141, %v175_v34   ;;  %1074 = vmatprep.subr.msk.mxu0 %vm231_vm0, %v202_v36 }
  0x39   : > { %702 = vperm.xlu0 %1140, %v174_v37   ;;  %1075 = vmatpush3.xpose.msk.msra.mxu0 %vm231_vm0, %v186_v39 }
  0x3a   : > { %697 = vperm.xlu1 %1141, %v173_v38   ;;  %1076 = vmatprep.subr.msk.mxu0 %vm231_vm0, %v201_v40 }
  0x3d   : > { %826 = vperm.xlu0 %1140, %v178_v41   ;;  %1077 = vmatpush3.xpose.msk.msra.mxu0 %vm231_vm0, %v185_v42 }
  0x3e   : > { %1078 = vmatprep.subr.msk.mxu0 %vm231_vm0, %v200_v43 }
  0x41   : > { %1079 = vmatpush3.xpose.msk.msra.mxu0 %vm231_vm0, %v184_v44 }
  0x42   : > { %1080 = vmatprep.subr.msk.mxu0 %vm231_vm0, %v199_v45 }
  0x45   : > { %1081 = vmatpush3.xpose.msk.msra.mxu0 %vm231_vm0, %v183_v46 }
  0x46   : > { %1082 = vmatprep.subr.msk.mxu0 %vm231_vm0, %v198_v47 }
  0x49   : > { %1083 = vmatpush3.xpose.msk.msra.mxu0 %vm231_vm0, %v182_v48 }
  0x4a   : > { %1084 = vmatprep.subr.msk.mxu0 %vm231_vm0, %v197_v49 }
  0x4d   : > { %1085 = vmatpush3.xpose.msk.msra.mxu0 %vm231_vm0, %v181_v50 }
  0x4e   : > { %1086 = vmatprep.subr.msk.mxu0 %vm231_vm0, %v196_v51 }
  0x51   : > { %1087 = vmatpush3.xpose.msk.msra.mxu0 %vm231_vm0, %v180_v52 }
  0x52   : > { %1088 = vmatprep.subr.msk.mxu0 %vm231_vm0, %v195_v53 }
  0x55   : > { %1089 = vmatpush3.xpose.msk.msra.mxu0 %vm231_vm0, %v179_v54 }
  0x58   : > { %1091 = vmatmul.mubr.msk.f32.vlgmr.msra.gmra.mxu0 %vm231_vm0, %v1277_v0 }
  0x59   : > { %1092 = vmatprep.mubr.msk.f32.mxu0 %vm231_vm0, %v146_v55 }
  0x5c   : > { %1093 = vmatmul.mubr.msk.f32.gmra.mxu0 %vm231_vm0, %v146_v55 }
  0x5d   : > { %1094 = vmatprep.mubr.msk.f32.mxu0 %vm231_vm0, %v147_v56 }
  0x60   : > { %1095 = vmatmul.mubr.msk.f32.gmra.mxu0 %vm231_vm0, %v147_v56 }
  0x61   : > { %1096 = vmatprep.mubr.msk.f32.mxu0 %vm231_vm0, %v148_v57 }
  0x64   : > { %1097 = vmatmul.mubr.msk.f32.gmra.mxu0 %vm231_vm0, %v148_v57 }
  0x90   : > { %v214_v59 = vpop.permute.xlu0 %213 }
  0x91   : > { %v224_v1 = vpop.permute.xlu1 %223 }
  0x94   : > { %v219_v62 = vpop.permute.xlu0 %218 }
  0x95   : > { %v229_v15 = vpop.permute.xlu1 %228 }
 0x118   : > { %v406_v60 = vpop.f32.mrf.mxu0 }
 0x119   : > { %v1435_v2 = vadd.f32 %v406_v60, %v214_v59 }
 0x11a   : > { %v408_v61 = vpop.f32.mrf.mxu0 }
 0x11b   : > { %v1439_v5 = vadd.f32 %v408_v61, %v214_v59  ;;  %v447_v9 = vmul.f32 %v1435_v2, %v1435_v2 }
 0x11c   : > { %v412_v63 = vpop.f32.mrf.mxu0 }
 0x11d   : > { %v1433_v0 = vadd.f32 %v412_v63, %v219_v62  ;;  %v448_v16 = vmul.f32 %v1439_v5, %v1439_v5 }
 0x11e   : > { %v414_v3 = vpop.f32.mrf.mxu0 }
 0x11f   : > { %v1437_v4 = vadd.f32 %v414_v3, %v219_v62  ;;  %v449_v6 = vmul.f32 %v1433_v0, %v1433_v0  ;;  %v429_v12 = vadd.f32 %v1433_v0, %v1435_v2 }
 0x120   : > { %v418_v7 = vpop.f32.mrf.mxu0 }
 0x121   : > { %v1443_v8 = vadd.f32 %v418_v7, %v224_v1  ;;  %v450_v10 = vmul.f32 %v1437_v4, %v1437_v4  ;;  %v455_v17 = vadd.f32 %v449_v6, %v447_v9  ;;  %v438_v19 = vadd.f32 %v1437_v4, %v1439_v5 }
 0x122   : > { %v420_v11 = vpop.f32.mrf.mxu0 }
 0x123   : > { %v451_v13 = vmul.f32 %v1443_v8, %v1443_v8  ;;  %v1453_v14 = vadd.f32 %v420_v11, %v224_v1  ;;  %v430_v20 = vadd.f32 %v429_v12, %v1443_v8  ;;  %v464_v23 = vadd.f32 %v450_v10, %v448_v16  ;;  %v519_v11 = vpop.permute.xlu0 %518  ;;  %v514_v12 = vpop.permute.xlu1 %513 }
 0x124   : > { %v424_v18 = vpop.f32.mrf.mxu0 }
 0x125   : > { %v452_v21 = vmul.f32 %v1453_v14, %v1453_v14  ;;  %v425_v22 = vadd.f32 %v424_v18, %v229_v15  ;;  %v456_v24 = vadd.f32 %v455_v17, %v451_v13  ;;  %v439_v26 = vadd.f32 %v438_v19, %v1453_v14 }
 0x126   : > { %v426_v25 = vpop.f32.mrf.mxu0 }
 0x127   : > { %v431_v27 = vadd.f32 %v430_v20, %v425_v22  ;;  %v453_v28 = vmul.f32 %v425_v22, %v425_v22  ;;  %v427_v29 = vadd.f32 %v426_v25, %v229_v15  ;;  %v465_v30 = vadd.f32 %v464_v23, %v452_v21  ;;  %v547_v13 = vpop.permute.xlu0 %546  ;;  %v509_v15 = vpop.permute.xlu1 %508 }
 0x129   : > { %v432_v31 = vrot.slane %v431_v27, 4  ;;  %v457_v32 = vadd.f32 %v456_v24, %v453_v28  ;;  %v440_v33 = vadd.f32 %v439_v26, %v427_v29  ;;  %v454_v34 = vmul.f32 %v427_v29, %v427_v29 }
 0x12b   : > { %v433_v35 = vadd.f32 %v432_v31, %v431_v27  ;;  %v458_v36 = vrot.slane %v457_v32, 4  ;;  %v441_v37 = vrot.slane %v440_v33, 4  ;;  %v466_v38 = vadd.f32 %v465_v30, %v454_v34  ;;  %v542_v28 = vpop.permute.xlu0 %541 }
 0x12d   : > { %v434_v39 = vrot.slane %v433_v35, 2  ;;  %v459_v40 = vadd.f32 %v458_v36, %v457_v32  ;;  %v442_v41 = vadd.f32 %v441_v37, %v440_v33  ;;  %v467_v42 = vrot.slane %v466_v38, 4 }
 0x12f   : > { %v435_v43 = vadd.f32 %v434_v39, %v433_v35  ;;  %v460_v44 = vrot.slane %v459_v40, 2  ;;  %v443_v45 = vrot.slane %v442_v41, 2  ;;  %v468_v46 = vadd.f32 %v467_v42, %v466_v38  ;;  %v504_v35 = vpop.permute.xlu1 %503 }
 0x131   : > { %v436_v47 = vrot.slane %v435_v43, 1  ;;  %v461_v48 = vadd.f32 %v460_v44, %v459_v40  ;;  %v444_v49 = vadd.f32 %v443_v45, %v442_v41  ;;  %v469_v50 = vrot.slane %v468_v46, 2  ;;  %v537_v41 = vpop.permute.xlu0 %536 }
 0x133   : > { %v437_v51 = vadd.f32 %v436_v47, %v435_v43  ;;  %v462_v52 = vrot.slane %v461_v48, 1  ;;  %v445_v53 = vrot.slane %v444_v49, 1  ;;  %v470_v54 = vadd.f32 %v469_v50, %v468_v46  ;;  %v532_v45 = vpop.permute.xlu1 %531 }
 0x135   : > { %v463_v55 = vadd.f32 %v462_v52, %v461_v48  ;;  %v473_v56 = vmul.f32 0.03125, %v437_v51  ;;  %v446_v57 = vadd.f32 %v445_v53, %v444_v49  ;;  %v471_v59 = vrot.slane %v470_v54, 1 }
 0x137   : > { %v475_v60 = vmul.f32 0.03125, %v463_v55  ;;  %v477_v61 = vmul.f32 %v473_v56, %v473_v56  ;;  %v472_v62 = vadd.f32 %v471_v59, %v470_v54  ;;  %v474_v63 = vmul.f32 0.03125, %v446_v57  ;;  %v162_v57 = vld [vmem:[%s1548_s1 + $0x88] sm:$0xff]  ;;  %v163_v59 = vld [vmem:[%s1548_s1 + $0x90] sm:$0xff] }
 0x138   : > { %v487_v16 = vsub.f32 %v425_v22, %v473_v56  ;;  %v485_v17 = vsub.f32 %v1443_v8, %v473_v56  ;;  %v483_v21 = vsub.f32 %v1433_v0, %v473_v56  ;;  %v481_v22 = vsub.f32 %v1435_v2, %v473_v56  ;;  %v161_v56 = vld [vmem:[%s1548_s1 + $0x80] sm:$0xff] }
 0x139   : > { %v479_v1 = vsub.f32 %v475_v60, %v477_v61  ;;  %v476_v3 = vmul.f32 0.03125, %v472_v62  ;;  %v478_v6 = vmul.f32 %v474_v63, %v474_v63  ;;  %v488_v23 = vsub.f32 %v427_v29, %v474_v63  ;;  %v164_v60 = vld [vmem:[%s1548_s1 + $0x98] sm:$0xff] }
 0x13a   : > { %v486_v24 = vsub.f32 %v1453_v14, %v474_v63  ;;  %v484_v25 = vsub.f32 %v1437_v4, %v474_v63  ;;  %v482_v26 = vsub.f32 %v1439_v5, %v474_v63 }
 0x13b   : > { %v489_v7 = vadd.f32 1e-05, %v479_v1  ;;  %v480_v9 = vsub.f32 %v476_v3, %v478_v6  ;;  %v583_v6 = vpop.permute.xlu0 %582 }
 0x13d   : > { %1142 = vrsqrt.f32 %v489_v7  ;;  %v490_v10 = vadd.f32 1e-05, %v480_v9  ;;  %v578_v9 = vpop.permute.xlu1 %577 }
 0x13f   : > { %1144 = vrsqrt.f32 %v490_v10 }
 0x14a   : > { %v1143_v18 = vpop.eup %1142 }
 0x14b   : > { %v499_v19 = vmul.f32 %v1143_v18, %v487_v16  ;;  %v497_v20 = vmul.f32 %v1143_v18, %v485_v17  ;;  %v495_v31 = vmul.f32 %v1143_v18, %v483_v21  ;;  %v493_v0 = vmul.f32 %v1143_v18, %v481_v22  ;;  %v573_v16 = vpop.permute.xlu0 %572 }
 0x14c   : > { %v1145_v27 = vpop.eup %1144 }
 0x14d   : > { %v527_v30 = vmul.f32 %v519_v11, %v499_v19  ;;  %v500_v32 = vmul.f32 %v1145_v27, %v488_v23  ;;  %v498_v8 = vmul.f32 %v1145_v27, %v486_v24  ;;  %v496_v33 = vmul.f32 %v1145_v27, %v484_v25 }
 0x14e   : > { %v494_v34 = vmul.f32 %v1145_v27, %v482_v26  ;;  %v525_v36 = vmul.f32 %v514_v12, %v497_v20  ;;  %v523_v4 = vmul.f32 %v509_v15, %v495_v31  ;;  %v521_v43 = vmul.f32 %v504_v35, %v493_v0  ;;  %v568_v20 = vpop.permute.xlu1 %567 }
 0x14f   : > { %v528_v29 = vmul.f32 %v519_v11, %v500_v32  ;;  %v526_v37 = vmul.f32 %v514_v12, %v498_v8  ;;  %v524_v14 = vmul.f32 %v509_v15, %v496_v33  ;;  %v555_v38 = vadd.f32 %v547_v13, %v527_v30  ;;  %v169_v32 = vld [vmem:[%s1548_s1 + $0xc0] sm:$0xff]  ;;  %v170_v8 = vld [vmem:[%s1548_s1 + $0xc8] sm:$0xff]  ;;  %v171_v33 = vld [vmem:[%s1548_s1 + $0xd0] sm:$0xff] }
 0x150   : > { %v522_v40 = vmul.f32 %v504_v35, %v494_v34  ;;  %v553_v42 = vadd.f32 %v542_v28, %v525_v36  ;;  %v551_v47 = vadd.f32 %v537_v41, %v523_v4  ;;  %v549_v51 = vadd.f32 %v532_v45, %v521_v43  ;;  %v172_v34 = vld [vmem:[%s1548_s1 + $0xd8] sm:$0xff] }
 0x151   : > { %v556_v39 = vadd.f32 %v547_v13, %v528_v29  ;;  %v554_v5 = vadd.f32 %v542_v28, %v526_v37  ;;  %v552_v2 = vadd.f32 %v537_v41, %v524_v14  ;;  %v563_v46 = vmax.f32 %v555_v38, 0.0  ;;  %v713_v14 = vpop.permute.xlu0 %712 }
 0x152   : > { %v550_v49 = vadd.f32 %v532_v45, %v522_v40  ;;  %v561_v50 = vmax.f32 %v553_v42, 0.0  ;;  %v559_v53 = vmax.f32 %v551_v47, 0.0  ;;  %v557_v55 = vmax.f32 %v549_v51, 0.0  ;;  %v708_v4 = vpop.permute.xlu1 %707 }
 0x153   : > { %v564_v44 = vmax.f32 %v556_v39, 0.0  ;;  %v562_v48 = vmax.f32 %v554_v5, 0.0  ;;  %v560_v52 = vmax.f32 %v552_v2, 0.0 }
 0x154   : > { %v558_v54 = vmax.f32 %v550_v49, 0.0 }
 0x155   : > { %622 = vmatprep.subr.mxu1 %v564_v44  ;;  %v703_v43 = vpop.permute.xlu0 %702 }
 0x156   : > { %623 = vmatpush1.msra.mxu1 %v563_v46  ;;  %v698_v46 = vpop.permute.xlu1 %697 }
 0x157   : > { %624 = vmatprep.subr.mxu1 %v562_v48 }
 0x158   : > { %625 = vmatpush1.msra.mxu1 %v561_v50 }
 0x159   : > { %626 = vmatprep.subr.mxu1 %v560_v52 }
 0x15a   : > { %627 = vmatpush1.msra.mxu1 %v559_v53 }
 0x15b   : > { %628 = vmatprep.subr.mxu1 %v558_v54 }
 0x15c   : > { %629 = vmatpush1.msra.mxu1 %v557_v55 }
 0x15d   : > { %1043 = vmatmul.mubr.msk.f32.vlgmr.msra.gmra.mxu1 %vm585_vm1, %v161_v56  ;;  %v177_v56 = vld [vmem:[%s1548_s1 + $0x100] sm:$0x1] }
 0x15e   : > { %668 = vmatprep.mubr.f32.mxu1 %v1209_v58 }
 0x161   : > { %1044 = vmatmul.mubr.msk.f32.gmra.mxu1 %vm585_vm1, %v162_v57  ;;  %v1210_v57 = vmov 1966171168  }
 0x162   : > { %674 = vmatprep.mubr.f32.mxu1 %v1209_v58 }
 0x165   : > { %1045 = vmatmul.mubr.msk.f32.gmra.mxu1 %vm585_vm1, %v163_v59  ;;  %v907_v59 = vunpack.c.l.s4 %v1210_v57 }
 0x166   : > { %680 = vmatprep.mubr.f32.mxu1 %v1209_v58 }
 0x169   : > { %1046 = vmatmul.mubr.msk.f32.gmra.mxu1 %vm585_vm1, %v164_v60  ;;  %v909_v60 = vlaneseq }
 0x16a   : > { %791 = vmatprep.mubr.f32.mxu1 %v1209_v58 }
 0x16b   : > { %vm923_vm2 = vcmp.lt.s32.totalorder %v909_v60, 256 }
 0x21d   : > { %v664_v61 = vpop.f32.mrf.mxu1 }
 0x21e   : > { %v665_v26 = vadd.f32 %v664_v61, %v568_v20  ;;  %v908_v61 = vunpack.c.0.s8 %v907_v59 }
 0x21f   : > { %v666_v62 = vpop.f32.mrf.mxu1 }
 0x220   : > { %v667_v24 = vadd.f32 %v666_v62, %v568_v20  ;;  %v687_v22 = vmax.f32 %v665_v26, 0.0  ;;  %v910_v62 = vshrl.u32 %v909_v60, 7 }
 0x221   : > { %v670_v63 = vpop.f32.mrf.mxu1 }
 0x222   : > { %v671_v21 = vadd.f32 %v670_v63, %v573_v16  ;;  %v688_v31 = vmax.f32 %v667_v24, 0.0 }
 0x223   : > { %v672_v1 = vpop.f32.mrf.mxu1 }
 0x224   : > { %v673_v18 = vadd.f32 %v672_v1, %v573_v16  ;;  %v689_v30 = vmax.f32 %v671_v21, 0.0  ;;  %v827_v1 = vpop.permute.xlu0 %826 }
 0x225   : > { %v676_v3 = vpop.f32.mrf.mxu1 }
 0x226   : > { %v677_v17 = vadd.f32 %v676_v3, %v578_v9  ;;  %v690_v28 = vmax.f32 %v673_v18, 0.0 }
 0x227   : > { %v678_v7 = vpop.f32.mrf.mxu1 }
 0x228   : > { %v679_v13 = vadd.f32 %v678_v7, %v578_v9  ;;  %v691_v27 = vmax.f32 %v677_v17, 0.0  ;;  %v911_v9 = vsub.s32 %v908_v61, %v910_v62 }
 0x229   : > { %v682_v10 = vpop.f32.mrf.mxu1 }
 0x22a   : > { %v683_v11 = vadd.f32 %v682_v10, %v583_v6  ;;  %v692_v25 = vmax.f32 %v679_v13, 0.0 }
 0x22b   : > { %v684_v12 = vpop.f32.mrf.mxu1 }
 0x22c   : > { %v685_v15 = vadd.f32 %v684_v12, %v583_v6  ;;  %v693_v23 = vmax.f32 %v683_v11, 0.0 }
 0x22e   : > { %v694_v19 = vmax.f32 %v685_v15, 0.0 }
 0x230   : > { %751 = vmatprep.subr.mxu1 %v694_v19 }
 0x231   : > { %752 = vmatpush1.msra.mxu1 %v693_v23 }
 0x232   : > { %753 = vmatprep.subr.mxu1 %v692_v25 }
 0x233   : > { %754 = vmatpush1.msra.mxu1 %v691_v27 }
 0x234   : > { %755 = vmatprep.subr.mxu1 %v690_v28 }
 0x235   : > { %756 = vmatpush1.msra.mxu1 %v689_v30 }
 0x236   : > { %757 = vmatprep.subr.mxu1 %v688_v31 }
 0x237   : > { %758 = vmatpush1.msra.mxu1 %v687_v22 }
 0x238   : > { %1047 = vmatmul.mubr.msk.f32.vlgmr.msra.gmra.mxu1 %vm585_vm1, %v169_v32 }
 0x239   : > { %797 = vmatprep.mubr.f32.mxu1 %v1209_v58 }
 0x23c   : > { %1048 = vmatmul.mubr.msk.f32.gmra.mxu1 %vm585_vm1, %v170_v8 }
 0x23d   : > { %803 = vmatprep.mubr.f32.mxu1 %v1209_v58 }
 0x240   : > { %1049 = vmatmul.mubr.msk.f32.gmra.mxu1 %vm585_vm1, %v171_v33 }
 0x241   : > { %809 = vmatprep.mubr.f32.mxu1 %v1209_v58 }
 0x244   : > { %1050 = vmatmul.mubr.msk.f32.gmra.mxu1 %vm585_vm1, %v172_v34 }
 0x245   : > { %896 = vmatprep.mubr.f32.mxu1 %v1209_v58 }
 0x2f8   : > { %v793_v35 = vpop.f32.mrf.mxu1 }
 0x2f9   : > { %v794_v50 = vadd.f32 %v793_v35, %v698_v46 }
 0x2fa   : > { %v795_v36 = vpop.f32.mrf.mxu1 }
 0x2fb   : > { %v796_v48 = vadd.f32 %v795_v36, %v698_v46  ;;  %v816_v55 = vmax.f32 %v794_v50, 0.0 }
 0x2fc   : > { %v799_v0 = vpop.f32.mrf.mxu1 }
 0x2fd   : > { %v800_v47 = vadd.f32 %v799_v0, %v703_v43  ;;  %v817_v54 = vmax.f32 %v796_v48, 0.0 }
 0x2fe   : > { %v801_v29 = vpop.f32.mrf.mxu1 }
 0x2ff   : > { %v802_v2 = vadd.f32 %v801_v29, %v703_v43  ;;  %v818_v53 = vmax.f32 %v800_v47, 0.0 }
 0x300   : > { %v805_v37 = vpop.f32.mrf.mxu1 }
 0x301   : > { %v806_v44 = vadd.f32 %v805_v37, %v708_v4  ;;  %v819_v52 = vmax.f32 %v802_v2, 0.0 }
 0x302   : > { %v807_v38 = vpop.f32.mrf.mxu1 }
 0x303   : > { %v808_v41 = vadd.f32 %v807_v38, %v708_v4  ;;  %v820_v51 = vmax.f32 %v806_v44, 0.0 }
 0x304   : > { %v811_v39 = vpop.f32.mrf.mxu1 }
 0x305   : > { %v812_v5 = vadd.f32 %v811_v39, %v713_v14  ;;  %v821_v49 = vmax.f32 %v808_v41, 0.0 }
 0x306   : > { %v813_v40 = vpop.f32.mrf.mxu1 }
 0x307   : > { %v814_v42 = vadd.f32 %v813_v40, %v713_v14  ;;  %v822_v58 = vmax.f32 %v812_v5, 0.0 }
 0x309   : > { %v823_v45 = vmax.f32 %v814_v42, 0.0 }
 0x30b   : > { %856 = vmatprep.subr.mxu1 %v823_v45 }
 0x30c   : > { %857 = vmatpush1.msra.mxu1 %v822_v58 }
 0x30d   : > { %858 = vmatprep.subr.mxu1 %v821_v49 }
 0x30e   : > { %859 = vmatpush1.msra.mxu1 %v820_v51 }
 0x30f   : > { %860 = vmatprep.subr.mxu1 %v819_v52 }
 0x310   : > { %861 = vmatpush1.msra.mxu1 %v818_v53 }
 0x311   : > { %862 = vmatprep.subr.mxu1 %v817_v54 }
 0x312   : > { %863 = vmatpush1.msra.mxu1 %v816_v55 }
 0x313   : > { %1051 = vmatmul.mubr.msk.f32.vlgmr.msra.gmra.mxu1 %vm585_vm1, %v177_v56 }
 0x3d3   : > { %v898_v63 = vpop.f32.mrf.mxu1 }
 0x3d4   : > { %v899_v6 = vadd.f32 %v898_v63, %v827_v1 }
 0x3d5   : > { %v900_v3 = vpop.f32.mrf.mxu1 }
 0x3d6   : > { %v901_v7 = vadd.f32 %v900_v3, %v827_v1 }
 0x3d8   : > { %v905_v10 = vcombine.low %v899_v6, %v901_v7 }
 0x3da   : > { %v912_v11 = vrot.slane %v905_v10, %v911_v9 }
 0x3dc   : > { %v919_v12 = vrot.slane %v912_v11, %v911_v9 }
 0x3de   : > { %925 = vst.msk [vmem:[%s137_s22] sm:$0x3] %vm923_vm2, %v919_v12 }
 0x3df   : > { %1159 = shalt.err (!%p1156_p3)
}
 0x3e0   : > { %s1160_s4 = scalar_lea.hbm %s939_s26, 32  ;;  %s1164_s6 = scalar_lea.hbm %s1549_s2, 64 }
 0x3e1   : > { %p1161_p4 = scmp.ne.s32.totalorder %s939_s26, %s1160_s4  ;;  %p1165_p9 = scmp.lt.s32.totalorder %s939_s26, %s1549_s2 }
 0x3e2   : > { %p1166_p10 = scmp.lt.s32.totalorder %s1164_s6, %s1160_s4 }
 0x3e3   : > { %p1162_p7 = pnand %p1161_p4, %p1262_p5 }
 0x3e4   : > { %p1167_p11 = por %p1166_p10, %p1165_p9 }
 0x3e5   : > { %p1163_p8 = pneg %p1162_p7 }
 0x3e7   : > { %p1168_p12 = pnand %p1167_p11, %p1163_p8 }
 0x3e9   : > { %1171 = shalt.err (!%p1168_p12)
}
 0x3ea   : > { %1098 = dma.vmem_to_hbm [thread:$0]  (%p1262_p5), %s942_s23, 32, %s939_s26, %s927_s27  }
 0x3eb PF: > { %p1104_p13 = scmp.ge.s32.totalorder %s1206_s12, 2  ;;  %s953_s14 = sand.u32 1, %s1194_s9  }
 0x3ec   : > { %s954_s8 = scalar_lea.sflag [#allocation3], %s953_s14 }
 0x3ed   : > { %p1101_p0 = pnand %p1104_p13, %p1266_p6 }
 0x3ef   : > { %p1102_p1 = pneg %p1101_p0 }
 0x3f1   : > { %1189 = dma.done.wait (%p1102_p1), %s954_s8, 32  }
 0x3f2   : > { %1191 = vsyncadd (%p1102_p1), %s954_s8, 4294967264  ;;  %p12_p2 = scmp.ge.s32.totalorder %s1250_s15, 4   ;;  %s1552_s9 = smov %s1198_s10 }
 0x3f3   : > { %s1553_s10 = smov %s1202_s11  ;;  %s1554_s11 = smov %s1260_s18 }
 0x3f4   : > { %s1555_s12 = smov %s1250_s15  ;;  %14 = sbr.rel (!%p12_p2) target bundleno = 3 (0x3), region = 63 }
 0x3f9   :  { %959 = vsyncpa [#allocation3], 1 }
 0x3fa   :  { %961 = vsyncpa [#allocation3 + $0x1], 1 }

</bundles_post_ra>
